<compile_context>
chip_gen: v6e
topology: v6e:2x2x1
jax: 0.10.0
libtpu: 0.0.40
codegen_flags: <defaults>
</compile_context>

<pallas_src>
import jax
import jax.numpy as jnp
from jax.experimental import pallas as pl
from jax.experimental.pallas import tpu as pltpu


def _round_up(x: int, m: int) -> int:
    return ((x + m - 1) // m) * m


def _is_v7x() -> bool:
    try:
        kind = jax.devices()[0].device_kind.lower()
        return "v7" in kind
    except Exception:
        return False


def _make_mlve_kernel(batch: int, block_b: int, blocks_per_split: int,
                      last_lane: int):
    """Builds the kernel body with the static sizes baked in."""

    def kernel(p_ref, t_ref, o_ref, acc_ref):
        c = pl.program_id(0)   # split axis ("parallel": both TCs on v7x)
        i = pl.program_id(1)   # batch-block axis ("arbitrary": accumulation)

        @pl.when(i == 0)
        def _init():
            acc_ref[...] = jnp.zeros_like(acc_ref)

        # (block_b, L) tile; upcast in-kernel (cheap VPU op, hides under DMA).
        p = p_ref[...].astype(jnp.float32)
        t = t_ref[...].astype(jnp.float32)
        shape = p.shape

        # Logical (unclamped) block index for this step.  Rows past the true
        # batch (partial trailing block / padded tail of the split) and lanes
        # other than the "last value" lane are excluded by a select.
        blk = c * blocks_per_split + i
        lane_ids = jax.lax.broadcasted_iota(jnp.int32, shape, 1)
        row_ids = blk * block_b + jax.lax.broadcasted_iota(jnp.int32, shape, 0)
        mask = (lane_ids == last_lane) & (row_ids < batch)

        diff = jnp.where(mask, jnp.abs(p - t), jnp.float32(0.0))
        # Fold block_b rows onto 8 sublanes with pure VPU adds; the single
        # cross-lane reduce happens only at finalize.
        acc_ref[...] += diff.reshape(-1, 8, shape[1]).sum(axis=0)

        @pl.when(i == pl.num_programs(1) - 1)
        def _finalize():
            o_ref[0, 0] = jnp.sum(acc_ref[...])   # per-split partial sum

    return kernel


def mean_last_value_error(predictions: jax.Array,
                          targets: jax.Array,
                          *,
                          block_batch=None) -> jax.Array:
    """mean(|predictions[:, -1] - targets[:, -1]|), computed on-chip."""
    assert predictions.shape == targets.shape
    assert predictions.ndim == 2, "expected (B, T) layout"
    B, T = predictions.shape

    itemsize = predictions.dtype.itemsize
    # Sub-32-bit dtypes pack rows along sublanes: keep batch tiles
    # packing-aligned (f32 -> 8 rows, bf16/f16 -> 16, int8/fp8 -> 32).
    row_align = max(8, 8 * (4 // max(1, itemsize)))
    if block_batch is None:
        base = 8192 if _is_v7x() else 4096            # rows, at f32 width
        block_batch = base * max(1, 4 // itemsize)    # same bytes for narrow dtypes
    block_batch = max(row_align, _round_up(int(block_batch), row_align))

    block_b = min(_round_up(B, row_align), block_batch)
    num_blocks = pl.cdiv(B, block_b)

    # Only fetch the single 128-lane block containing the last column; a
    # partial trailing lane block (T % 128 != 0) is padded and masked.
    if T >= 128:
        lane_block = 128
        lane_block_idx = (T - 1) // 128
        last_lane = (T - 1) % 128
    else:
        lane_block = T
        lane_block_idx = 0
        last_lane = T - 1

    # Split the batch across a leading "parallel" grid axis (both TensorCores
    # on v7x; near-zero cost on single-TC chips).
    num_splits = 2 if num_blocks >= 2 else 1
    blocks_per_split = pl.cdiv(num_blocks, num_splits)

    kernel = _make_mlve_kernel(B, block_b, blocks_per_split, last_lane)

    def in_index_map(c, i):
        # Clamp the padded tail of the last split onto a valid block; its
        # contribution is zeroed by the in-kernel row mask.
        return (jnp.minimum(c * blocks_per_split + i, num_blocks - 1),
                lane_block_idx)

    in_spec = pl.BlockSpec((block_b, lane_block), in_index_map)

    # Headroom over the double-buffered input tiles (v5e's scoped default is
    # only 16 MiB; v6e/v7x default is 32 MiB).
    tile_bytes = block_b * lane_block * itemsize
    vmem_limit = max(32 << 20, 4 * tile_bytes + (2 << 20))

    partials = pl.pallas_call(
        kernel,
        out_shape=jax.ShapeDtypeStruct((num_splits, 1), jnp.float32),
        grid=(num_splits, blocks_per_split),
        in_specs=[in_spec, in_spec],
        out_specs=pl.BlockSpec((1, 1), lambda c, i: (c, 0),
                               memory_space=pltpu.MemorySpace.SMEM),
        scratch_shapes=[pltpu.VMEM((8, lane_block), jnp.float32)],
        compiler_params=pltpu.CompilerParams(
            dimension_semantics=("parallel", "arbitrary"),
            vmem_limit_bytes=vmem_limit),
    )(predictions, targets)

    # TODO(synk): torch module returns a Python float(); we return a 0-d array.
    return jnp.sum(partials) / jnp.float32(B)


if __name__ == "__main__":
    key = jax.random.PRNGKey(0)
    kp, kt, kp2, kt2, kp3, kt3 = jax.random.split(key, 6)

    # Case 1: small (B, T) f32, single block (matches the module's usage).
    B, T = 8, 16
    predictions = jax.random.normal(kp, (B, T), dtype=jnp.float32)
    targets = jax.random.normal(kt, (B, T), dtype=jnp.float32)
    result = mean_last_value_error(predictions, targets)
    jax.block_until_ready(result)
    ref = jnp.mean(jnp.abs(predictions[:, -1] - targets[:, -1]))
    assert jnp.allclose(result, ref, rtol=1e-5, atol=1e-6), (
        float(result), float(ref))

    # Case 2: bf16 inputs, batch-tiled 2-D grid (parallel split + partial
    # trailing batch block) and the single-128-lane-block DMA path.
    B2, T2 = 80, 256
    p2 = jax.random.normal(kp2, (B2, T2), dtype=jnp.float32).astype(jnp.bfloat16)
    t2 = jax.random.normal(kt2, (B2, T2), dtype=jnp.float32).astype(jnp.bfloat16)
    result2 = mean_last_value_error(p2, t2, block_batch=32)
    jax.block_until_ready(result2)
    ref2 = jnp.mean(jnp.abs(p2[:, -1].astype(jnp.float32)
                            - t2[:, -1].astype(jnp.float32)))
    assert jnp.allclose(result2, ref2, rtol=1e-5, atol=1e-6), (
        float(result2), float(ref2))

    # Case 3: non-128-aligned T (partial trailing lane block) and B not a
    # multiple of 8 (partial trailing batch block).
    B3, T3 = 20, 200
    p3 = jax.random.normal(kp3, (B3, T3), dtype=jnp.float32)
    t3 = jax.random.normal(kt3, (B3, T3), dtype=jnp.float32)
    result3 = mean_last_value_error(p3, t3)
    jax.block_until_ready(result3)
    ref3 = jnp.mean(jnp.abs(p3[:, -1] - t3[:, -1]))
    assert jnp.allclose(result3, ref3, rtol=1e-5, atol=1e-6), (
        float(result3), float(ref3))

    print("KERNEL_OK")
</pallas_src>

<mosaic_0001>
module attributes {stable_mosaic.version = 11 : i64} {
  func.func @kernel(%arg0: i32, %arg1: i32, %arg2: memref<8x16xf32, #tpu.memory_space<vmem>>, %arg3: memref<8x16xf32, #tpu.memory_space<vmem>>, %arg4: memref<1x1xf32, #tpu.memory_space<smem>>, %arg5: memref<8x16xf32, #tpu.memory_space<vmem>>) attributes {dimension_semantics = [#tpu.dimension_semantics<parallel>, #tpu.dimension_semantics<arbitrary>], iteration_bounds = array<i64: 1, 1>, scalar_prefetch = 0 : i64, scratch_operands = 1 : i64, tpu.core_type = #tpu.core_type<tc>, window_params = [{transform_indices = @transform_0, window_bounds = array<i64: 8, 16>}, {transform_indices = @transform_1, window_bounds = array<i64: 8, 16>}, {transform_indices = @transform_2, window_bounds = array<i64: 1, 1>}]} {
    %c0_i32 = arith.constant 0 : i32
    %0 = arith.cmpi eq, %arg1, %c0_i32 : i32
    %1 = arith.extui %0 : i1 to i32
    %c0_i32_0 = arith.constant 0 : i32
    %2 = arith.cmpi ne, %1, %c0_i32_0 : i32
    scf.if %2 {
      %cst_12 = arith.constant 0.000000e+00 : f32
      %29 = vector.broadcast %cst_12 : f32 to vector<8x16xf32>
      %c0_13 = arith.constant 0 : index
      %c0_14 = arith.constant 0 : index
      %30 = vector.load %arg5[%c0_13, %c0_14] : memref<8x16xf32, #tpu.memory_space<vmem>>, vector<8x16xf32>
      tpu.vector_store %arg5[%c0_13, %c0_14], %29 {strides = array<i32>} : memref<8x16xf32, #tpu.memory_space<vmem>>, vector<8x16xf32>,
    } else {
    }
    %c0 = arith.constant 0 : index
    %c0_1 = arith.constant 0 : index
    %3 = vector.load %arg2[%c0, %c0_1] : memref<8x16xf32, #tpu.memory_space<vmem>>, vector<8x16xf32>
    %c0_2 = arith.constant 0 : index
    %c0_3 = arith.constant 0 : index
    %4 = vector.load %arg3[%c0_2, %c0_3] : memref<8x16xf32, #tpu.memory_space<vmem>>, vector<8x16xf32>
    %c1_i32 = arith.constant 1 : i32
    %5 = arith.muli %arg0, %c1_i32 : i32
    %6 = arith.addi %5, %arg1 : i32
    %7 = tpu.iota {dimensions = array<i32: 1>} : vector<8x16xi32>
    %c8_i32 = arith.constant 8 : i32
    %8 = arith.muli %6, %c8_i32 : i32
    %9 = tpu.iota {dimensions = array<i32: 0>} : vector<8x16xi32>
    %10 = vector.broadcast %8 : i32 to vector<8x16xi32>
    %11 = arith.addi %10, %9 : vector<8x16xi32>
    %c15_i32 = arith.constant 15 : i32
    %12 = vector.broadcast %c15_i32 : i32 to vector<8x16xi32>
    %13 = arith.cmpi eq, %7, %12 : vector<8x16xi32>
    %c8_i32_4 = arith.constant 8 : i32
    %14 = vector.broadcast %c8_i32_4 : i32 to vector<8x16xi32>
    %15 = arith.cmpi slt, %11, %14 : vector<8x16xi32>
    %16 = arith.andi %13, %15 : vector<8x16xi1>
    %17 = arith.subf %3, %4 : vector<8x16xf32>
    %18 = math.absf %17 : vector<8x16xf32>
    %cst = arith.constant 0.000000e+00 : f32
    %19 = vector.broadcast %cst : f32 to vector<8x16xf32>
    %20 = arith.select %16, %18, %19 : vector<8x16xi1>, vector<8x16xf32>
    %c0_5 = arith.constant 0 : index
    %c0_6 = arith.constant 0 : index
    %21 = vector.load %arg5[%c0_5, %c0_6] : memref<8x16xf32, #tpu.memory_space<vmem>>, vector<8x16xf32>
    %22 = vector.shape_cast %20 : vector<8x16xf32> to vector<1x8x16xf32>
    %cst_7 = arith.constant dense<0.000000e+00> : vector<8x16xf32>
    %23 = vector.multi_reduction <add>, %22, %cst_7 [0] : vector<1x8x16xf32> to vector<8x16xf32>
    %24 = arith.addf %21, %23 : vector<8x16xf32>
    %c0_8 = arith.constant 0 : index
    %c0_9 = arith.constant 0 : index
    %25 = vector.load %arg5[%c0_8, %c0_9] : memref<8x16xf32, #tpu.memory_space<vmem>>, vector<8x16xf32>
    tpu.vector_store %arg5[%c0_8, %c0_9], %24 {strides = array<i32>} : memref<8x16xf32, #tpu.memory_space<vmem>>, vector<8x16xf32>,
    %c0_i32_10 = arith.constant 0 : i32
    %26 = arith.cmpi eq, %arg1, %c0_i32_10 : i32
    %27 = arith.extui %26 : i1 to i32
    %c0_i32_11 = arith.constant 0 : i32
    %28 = arith.cmpi ne, %27, %c0_i32_11 : i32
    scf.if %28 {
      %c0_12 = arith.constant 0 : index
      %c0_13 = arith.constant 0 : index
      %29 = vector.load %arg5[%c0_12, %c0_13] : memref<8x16xf32, #tpu.memory_space<vmem>>, vector<8x16xf32>
      %30 = vector.shape_cast %29 : vector<8x16xf32> to vector<1x8x16xf32>
      %cst_14 = arith.constant dense<0.000000e+00> : vector<1xf32>
      %31 = vector.multi_reduction <add>, %30, %cst_14 [1, 2] : vector<1x8x16xf32> to vector<1xf32>
      %32 = vector.shape_cast %31 : vector<1xf32> to vector<1x1x1xf32>
      %33 = vector.extract %32[0, 0, 0] : f32 from vector<1x1x1xf32>
      %c0_15 = arith.constant 0 : index
      %c0_16 = arith.constant 0 : index
      %34 = memref.load %arg4[%c0_15, %c0_16] : memref<1x1xf32, #tpu.memory_space<smem>>
      memref.store %33, %arg4[%c0_15, %c0_16] : memref<1x1xf32, #tpu.memory_space<smem>>
    } else {
    }
    return
  }
  func.func @transform_0(%arg0: i32, %arg1: i32) -> (i32, i32) {
    %c1_i32 = arith.constant 1 : i32
    %0 = arith.muli %arg0, %c1_i32 : i32
    %1 = arith.addi %0, %arg1 : i32
    %c0_i32 = arith.constant 0 : i32
    %2 = arith.minsi %1, %c0_i32 : i32
    %c0_i32_0 = arith.constant 0 : i32
    %c0_i32_1 = arith.constant 0 : i32
    return %2, %c0_i32_0 : i32, i32
  }
  func.func @transform_1(%arg0: i32, %arg1: i32) -> (i32, i32) {
    %c1_i32 = arith.constant 1 : i32
    %0 = arith.muli %arg0, %c1_i32 : i32
    %1 = arith.addi %0, %arg1 : i32
    %c0_i32 = arith.constant 0 : i32
    %2 = arith.minsi %1, %c0_i32 : i32
    %c0_i32_0 = arith.constant 0 : i32
    %c0_i32_1 = arith.constant 0 : i32
    return %2, %c0_i32_0 : i32, i32
  }
  func.func @transform_2(%arg0: i32, %arg1: i32) -> (i32, i32) {
    %c0_i32 = arith.constant 0 : i32
    %c0_i32_0 = arith.constant 0 : i32
    return %arg0, %c0_i32 : i32, i32
  }
}

</mosaic_0001>

<bundles_post_ra>
// kernel: tpu_custom_call.1
= control target key start
LH: loop header
LB: loop body
LE: loop exit
PB: predicated region body
PF: predicated region fallthrough
CT: control target
= control target key end

     0   :  { %7 = vsyncpa [#allocation4], 0  ;;  %s202_s0 = inlined_call_operand.hbm [shape: f32[8,16], index: 0, kind: input, shape index: {}]   ;;  %s203_s1 = inlined_call_operand.hbm [shape: f32[8,16], index: 1, kind: input, shape index: {}]   ;;  %s204_s2 = inlined_call_operand.hbm [shape: f32[1,1], index: 2, kind: output, shape index: {}]  }
   0x1   :  { %8 = vsyncpa [#allocation7], 0 }
   0x2   :  { %9 = vsyncpa [#allocation5], 0  ;;  %s174_s9 = smov [#allocation3]   ;;  %s175_s11 = smov [#allocation6]  }
   0x3   :  { %s21_s10 = sshll.u32 %s174_s9, 4  ;;  %s36_s12 = sshll.u32 %s175_s11, 4  ;;  %s22_s10 = int_to_ptr.vmem [resolvable:$true] %s21_s10  ;;  %s37_s12 = int_to_ptr.vmem [resolvable:$true] %s36_s12 }
   0x4   :  { %s128_s13 = scalar_lea.vmem %s22_s10, 128  ;;  %p133_p1 = scmp.lt.s32.totalorder %s22_s10, %s22_s10 }
   0x5   :  { %p129_p0 = scmp.ne.s32.totalorder %s22_s10, %s128_s13  ;;  %p134_p2 = scmp.lt.s32.totalorder %s128_s13, %s128_s13 }
   0x7   :  { %p135_p3 = por %p134_p2, %p133_p1 }
   0x9   :  { %p136_p4 = pnand %p135_p3, %p129_p0 }
   0xb   :  { %139 = shalt.err (!%p136_p4)
}
   0xc   :  { %24 = dma.hbm_to_vmem [thread:$0]  %s202_s0, 128, %s22_s10, [#allocation4]  }
   0xd   :  { %s148_s16 = scalar_lea.vmem %s37_s12, 128  ;;  %p153_p6 = scmp.lt.s32.totalorder %s37_s12, %s37_s12 }
   0xe   :  { %p149_p5 = scmp.ne.s32.totalorder %s37_s12, %s148_s16  ;;  %p154_p7 = scmp.lt.s32.totalorder %s148_s16, %s148_s16 }
  0x10   :  { %p155_p8 = por %p154_p7, %p153_p6 }
  0x12   :  { %p156_p9 = pnand %p155_p8, %p149_p5 }
  0x14   :  { %159 = shalt.err (!%p156_p9)
}
  0x15   :  { %39 = dma.hbm_to_vmem [thread:$0]  %s203_s1, 128, %s37_s12, [#allocation7]  }
  0x16   :  { %168 = dma.done.wait [#allocation4], 128  }
  0x17   :  { %169 = vsyncadd [#allocation4], 4294967168 }
  0x18   :  { %170 = dma.done.wait [#allocation7], 128  }
  0x19   :  { %171 = vsyncadd [#allocation7], 4294967168  ;;  %vm56_vm0 = vcmask 130048   ;;  %v176_v0 = vmov 0.0   ;;  %v61_v1 = vlaneseq  ;;  %v58_v3 = vld [vmem:[#allocation3] sm:$0xff]  ;;  %v59_v4 = vld [vmem:[#allocation6] sm:$0xff] }
  0x1a   :  { %57 = vst.msk [vmem:[#allocation2] sm:$0xff] %vm56_vm0, %v176_v0  ;;  %v71_v5 = vsub.f32 %v58_v3, %v59_v4  ;;  %s177_s1 = smov [#allocation8]  }
  0x1b   :  { %v62_v2 = vand.u32 127, %v61_v1 }
  0x1c   :  { %v72_v6 = vand.u32 2147483647, %v71_v5 }
  0x1d   :  { %vm68_vm1 = vcmp.eq.s32.totalorder %v62_v2, 15 }
  0x1e   :  { %v73_v8 = vsel %vm68_vm1, %v72_v6, 0.0 }
  0x21   :  { %v74_v7 = vld [vmem:[#allocation2] sm:$0xff] }
  0x22   :  { %v76_v9 = vadd.f32 %v74_v7, %v73_v8 }
  0x24   :  { %78 = vst.msk [vmem:[#allocation2] sm:$0xff] %vm56_vm0, %v76_v9 }
  0x2b   :  { %v82_v10 = vld [vmem:[#allocation2] sm:$0xff] }
  0x2c   :  { %v83_v11 = vsel %vm56_vm0, %v82_v10, 0.0 }
  0x2d   :  { %84 = vadd.xlane.f32.xlu0 %v83_v11 }
  0xb6   :  { %v85_v12 = vpop.xlane.xlu0 %84 }
  0xb7   :  { %v86_v13 = vrot.slane %v85_v12, 4 }
  0xb9   :  { %v87_v14 = vadd.f32 %v86_v13, %v85_v12 }
  0xbb   :  { %v88_v15 = vrot.slane %v87_v14, 2 }
  0xbd   :  { %v89_v16 = vadd.f32 %v88_v15, %v87_v14 }
  0xbf   :  { %v90_v17 = vrot.slane %v89_v16, 1 }
  0xc1   :  { %v91_v18 = vadd.f32 %v90_v17, %v89_v16 }
  0xc3   :  { %114 = vpush %v91_v18 }
  0xf4   :  { %s115_s0 = spop %114 }
  0xf5   :  { %94 = sst [smem:[#allocation8]] %s115_s0 }
  0xf6   :  { %102 = dma.smem_to_hbm %s177_s1, 16, %s204_s2, [#allocation5]  }
  0xf7   :  { %172 = dma.done.wait [#allocation5], 16  }
  0xf8   :  { %173 = vsyncadd [#allocation5], 4294967280 }
  0xf9   :  { %106 = sfence }
  0xfa   :  { %107 = vsyncpa [#allocation4], 1 }
  0xfb   :  { %108 = vsyncpa [#allocation7], 1 }
  0xfc   :  { %109 = vsyncpa [#allocation5], 1 }

</bundles_post_ra>
